<compile_context>
chip_gen: v7x
topology: tpu7x:2x2x1
jax: 0.10.0
libtpu: 0.0.40
codegen_flags: <defaults>
</compile_context>

<pallas_src>
import functools

import jax
import jax.numpy as jnp
from jax.experimental import pallas as pl
from jax.experimental.pallas import tpu as pltpu


def tsn_forward(x, conv_w, conv_b, fc_w, fc_b, num_segments):
    """x: (batch, num_segments * C, H, W) float32 (NCHW, PyTorch convention)."""
    B, TC, H, W = x.shape
    F, C, KH, KW = conv_w.shape
    assert (KH, KW) == (3, 3)
    T = num_segments
    assert TC == T * C
    num_class = fc_w.shape[0]

    Hp, Wp = H + 2, W + 2              # SAME padding for the 3x3 conv
    Q = H * Wp                         # flattened output grid (rows keep Wp width)
    L = Hp * Wp + 2                    # largest in-kernel slice end: (2*Wp + 2) + Q
    Lp = ((L + 127) // 128) * 128      # lane-padded flattened frame length
    Cp = 4                             # channel pad (keeps bf16 sublane pairs aligned)
    Kp = 9 * Cp                        # stacked im2col contraction dim
    HW = H * W
    inv_norm = 1.0 / float(T * H * W)  # consensus (1/T) * AdaptiveAvgPool2d(1) (1/(H*W))

    # ---- host-side glue: tiny parameter prep only; frames are passed RAW (no padded copy)
    xf = x.reshape(B, T, C, HW)                                   # metadata-only reshape

    w9 = conv_w.transpose(2, 3, 1, 0).reshape(9, C, F)            # [tap, c, f], tap=ky*3+kx
    w9 = jnp.pad(w9, ((0, 0), (0, Cp - C), (0, 0)))               # [tap, Cp, f]
    w_stk = w9.reshape(Kp, F).T.astype(jnp.bfloat16)              # (F, Kp), col = Cp*tap + c
    b_col = conv_b.reshape(F, 1).astype(jnp.float32)
    cols = jnp.arange(Q, dtype=jnp.int32) % Wp
    mask = (cols < W).astype(jnp.float32).reshape(1, Q)           # valid-column mask

    def kernel(x_ref, w_ref, b_ref, m_ref, out_ref, slab, rhs, acc):
        # x_ref : (C, H*W) f32   raw frame for (video b, segment t)
        # w_ref : (F, Kp)  bf16  stacked conv taps
        # b_ref : (F, 1)   f32   conv bias
        # m_ref : (1, Q)   f32   valid-column mask
        # out_ref: (1, F)  f32   lane-dense pooled + consensus features for video b
        # slab  : (Cp, Lp) f32   zero-padded flattened frame (scratch)
        # rhs   : (Kp, Q)  bf16  stacked im2col RHS (scratch)
        # acc   : (F, 1)   f32   pooled-feature accumulator over segments (scratch)
        t = pl.program_id(1)

        @pl.when(t == 0)
        def _init():                                  # once per video (per core)
            slab[...] = jnp.zeros_like(slab)
            acc[...] = jnp.zeros_like(acc)

        # Scatter the raw frame rows into the zero-padded flat slab (SAME padding).
        fr = x_ref[...]                               # (C, H*W) f32
        for h in range(H):                            # static: H=16 at toy scale
            base = (h + 1) * Wp + 1
            slab[0:C, base:base + W] = fr[:, h * W:(h + 1) * W]

        # In-kernel im2col: stack the 9 lane-shifted views on sublanes -> one matmul.
        for k in range(9):
            off = (k // 3) * Wp + (k % 3)
            rhs[k * Cp:(k + 1) * Cp, :] = slab[:, off:off + Q].astype(jnp.bfloat16)

        conv = jnp.dot(w_ref[...], rhs[...],
                       preferred_element_type=jnp.float32)        # (F, Q) f32
        act = jnp.maximum(conv + b_ref[...], 0.0) * m_ref[...]    # bias + ReLU + mask
        acc[...] += jnp.sum(act, axis=1, keepdims=True)           # pooled (F, 1)

        @pl.when(t == pl.num_programs(1) - 1)
        def _fin():                                   # consensus-normalized features
            out_ref[...] = jnp.transpose(acc[...] * inv_norm)     # (1, F) lane-dense

    feats = pl.pallas_call(
        kernel,
        out_shape=jax.ShapeDtypeStruct((B, 1, F), jnp.float32),
        grid_spec=pltpu.PrefetchScalarGridSpec(
            num_scalar_prefetch=0,
            grid=(B, T),                              # B parallel, T = reduction axis
            in_specs=[
                pl.BlockSpec((None, None, C, HW), lambda b, t: (b, t, 0, 0)),
                pl.BlockSpec((F, Kp), lambda b, t: (0, 0)),
                pl.BlockSpec((F, 1), lambda b, t: (0, 0)),
                pl.BlockSpec((1, Q), lambda b, t: (0, 0)),
            ],
            out_specs=pl.BlockSpec((None, 1, F), lambda b, t: (b, 0, 0)),
            scratch_shapes=[
                pltpu.VMEM((Cp, Lp), jnp.float32),
                pltpu.VMEM((Kp, Q), jnp.bfloat16),
                pltpu.VMEM((F, 1), jnp.float32),
            ],
        ),
        compiler_params=pltpu.CompilerParams(
            dimension_semantics=("parallel", "arbitrary"),
            vmem_limit_bytes=32 * 1024 * 1024,
        ),
    )(xf, w_stk, b_col, mask)

    # Head in plain XLA: features are already consensus-averaged, so the linear new_fc
    # commutes (dropout identity at inference).  (B,F)x(F,num_class) is lane-dense.
    feats = feats.reshape(B, F)
    return feats @ fc_w.T + fc_b                                  # (B, num_class)


# ---------------------------------------------------------------------------
# Pure-JAX reference for correctness
# ---------------------------------------------------------------------------
def tsn_reference(x, conv_w, conv_b, fc_w, fc_b, num_segments):
    B, TC, H, W = x.shape
    C = conv_w.shape[1]
    frames = x.reshape(-1, C, H, W)
    y = jax.lax.conv_general_dilated(
        frames, conv_w, window_strides=(1, 1), padding="SAME",
        dimension_numbers=("NCHW", "OIHW", "NCHW"))
    y = y + conv_b[None, :, None, None]
    y = jnp.maximum(y, 0.0)
    feat = y.mean(axis=(2, 3))                                    # (N, F)
    logits = feat @ fc_w.T + fc_b                                 # (N, num_class)
    return logits.reshape(B, num_segments, -1).mean(axis=1)       # (B, num_class)


if __name__ == "__main__":
    # Small shapes consistent with TSN (modality='RGB', new_length=1 -> sample_len=3).
    batch = 2
    num_segments = 4
    C = 3
    H = W = 16
    feature_dim = 32          # stand-in for ResNet feature_dim (2048 in resnet101)
    num_class = 8

    key = jax.random.PRNGKey(0)
    k_x, k_cw, k_cb, k_fw = jax.random.split(key, 4)

    x = jax.random.normal(k_x, (batch, num_segments * C, H, W), dtype=jnp.float32)

    # backbone conv parameters (deterministic synthetic init)
    conv_w = jax.random.normal(k_cw, (feature_dim, C, 3, 3), dtype=jnp.float32) * 0.05
    conv_b = jax.random.normal(k_cb, (feature_dim,), dtype=jnp.float32) * 0.05

    # new_fc: normal_(weight, 0, 0.001); constant_(bias, 0)  (matches _prepare_tsn)
    fc_w = jax.random.normal(k_fw, (num_class, feature_dim), dtype=jnp.float32) * 0.001
    fc_b = jnp.zeros((num_class,), dtype=jnp.float32)

    fwd = jax.jit(functools.partial(tsn_forward, num_segments=num_segments))
    out = jax.block_until_ready(fwd(x, conv_w, conv_b, fc_w, fc_b))

    ref = tsn_reference(x, conv_w, conv_b, fc_w, fc_b, num_segments)
    assert out.shape == (batch, num_class), out.shape
    # bf16 conv operands / f32 accumulation: error on these ~1e-3-scale logits is << 1e-4.
    assert jnp.allclose(out, ref, atol=1e-4, rtol=1e-3), (out, ref)

    print("KERNEL_OK")
</pallas_src>

<mosaic_0001>
module attributes {stable_mosaic.version = 11 : i64} {
  func.func @kernel(%arg0: i32, %arg1: i32, %arg2: memref<1x1x3x256xf32, #tpu.memory_space<vmem>>, %arg3: memref<32x36xbf16, #tpu.memory_space<vmem>>, %arg4: memref<32x1xf32, #tpu.memory_space<vmem>>, %arg5: memref<1x288xf32, #tpu.memory_space<vmem>>, %arg6: memref<1x1x32xf32, #tpu.memory_space<vmem>>, %arg7: memref<4x384xf32, #tpu.memory_space<vmem>>, %arg8: memref<36x288xbf16, #tpu.memory_space<vmem>>, %arg9: memref<32x1xf32, #tpu.memory_space<vmem>>) attributes {dimension_semantics = [#tpu.dimension_semantics<parallel>, #tpu.dimension_semantics<arbitrary>], iteration_bounds = array<i64: 2, 4>, scalar_prefetch = 0 : i64, scratch_operands = 3 : i64, tpu.core_type = #tpu.core_type<tc>, window_params = [{transform_indices = @transform_0, window_bounds = array<i64: 1, 1, 3, 256>}, {pipeline_mode = #tpu.pipeline_mode<synchronous>, transform_indices = @transform_1, window_bounds = array<i64: 32, 36>}, {pipeline_mode = #tpu.pipeline_mode<synchronous>, transform_indices = @transform_2, window_bounds = array<i64: 32, 1>}, {pipeline_mode = #tpu.pipeline_mode<synchronous>, transform_indices = @transform_3, window_bounds = array<i64: 1, 288>}, {transform_indices = @transform_4, window_bounds = array<i64: 1, 1, 32>}]} {
    %c0_i32 = arith.constant 0 : i32
    %0 = arith.cmpi eq, %arg1, %c0_i32 : i32
    %1 = arith.extui %0 : i1 to i32
    %c0_i32_0 = arith.constant 0 : i32
    %2 = arith.cmpi ne, %1, %c0_i32_0 : i32
    scf.if %2 {
      %cst_58 = arith.constant 0.000000e+00 : f32
      %83 = vector.broadcast %cst_58 : f32 to vector<4x384xf32>
      %c0_59 = arith.constant 0 : index
      %c0_60 = arith.constant 0 : index
      %84 = vector.load %arg7[%c0_59, %c0_60] : memref<4x384xf32, #tpu.memory_space<vmem>>, vector<4x384xf32>
      tpu.vector_store %arg7[%c0_59, %c0_60], %83 {strides = array<i32>} : memref<4x384xf32, #tpu.memory_space<vmem>>, vector<4x384xf32>,
      %cst_61 = arith.constant 0.000000e+00 : f32
      %85 = vector.broadcast %cst_61 : f32 to vector<32x1xf32>
      %c0_62 = arith.constant 0 : index
      %c0_63 = arith.constant 0 : index
      %86 = vector.load %arg9[%c0_62, %c0_63] : memref<32x1xf32, #tpu.memory_space<vmem>>, vector<32x1xf32>
      tpu.vector_store %arg9[%c0_62, %c0_63], %85 {strides = array<i32>} : memref<32x1xf32, #tpu.memory_space<vmem>>, vector<32x1xf32>,
    } else {
    }
    %c0 = arith.constant 0 : index
    %c0_1 = arith.constant 0 : index
    %c0_2 = arith.constant 0 : index
    %c0_3 = arith.constant 0 : index
    %3 = vector.load %arg2[%c0, %c0_1, %c0_2, %c0_3] : memref<1x1x3x256xf32, #tpu.memory_space<vmem>>, vector<1x1x3x256xf32>
    %4 = vector.shape_cast %3 : vector<1x1x3x256xf32> to vector<3x256xf32>
    %5 = vector.extract_strided_slice %4 {offsets = [0, 0], sizes = [3, 16], strides = [1, 1]} : vector<3x256xf32> to vector<3x16xf32>
    %c0_4 = arith.constant 0 : index
    %c19 = arith.constant 19 : index
    %6 = vector.load %arg7[%c0_4, %c19] : memref<4x384xf32, #tpu.memory_space<vmem>>, vector<3x16xf32>
    tpu.vector_store %arg7[%c0_4, %c19], %5 {strides = array<i32>} : memref<4x384xf32, #tpu.memory_space<vmem>>, vector<3x16xf32>,
    %7 = vector.extract_strided_slice %4 {offsets = [0, 16], sizes = [3, 16], strides = [1, 1]} : vector<3x256xf32> to vector<3x16xf32>
    %c0_5 = arith.constant 0 : index
    %c37 = arith.constant 37 : index
    %8 = vector.load %arg7[%c0_5, %c37] : memref<4x384xf32, #tpu.memory_space<vmem>>, vector<3x16xf32>
    tpu.vector_store %arg7[%c0_5, %c37], %7 {strides = array<i32>} : memref<4x384xf32, #tpu.memory_space<vmem>>, vector<3x16xf32>,
    %9 = vector.extract_strided_slice %4 {offsets = [0, 32], sizes = [3, 16], strides = [1, 1]} : vector<3x256xf32> to vector<3x16xf32>
    %c0_6 = arith.constant 0 : index
    %c55 = arith.constant 55 : index
    %10 = vector.load %arg7[%c0_6, %c55] : memref<4x384xf32, #tpu.memory_space<vmem>>, vector<3x16xf32>
    tpu.vector_store %arg7[%c0_6, %c55], %9 {strides = array<i32>} : memref<4x384xf32, #tpu.memory_space<vmem>>, vector<3x16xf32>,
    %11 = vector.extract_strided_slice %4 {offsets = [0, 48], sizes = [3, 16], strides = [1, 1]} : vector<3x256xf32> to vector<3x16xf32>
    %c0_7 = arith.constant 0 : index
    %c73 = arith.constant 73 : index
    %12 = vector.load %arg7[%c0_7, %c73] : memref<4x384xf32, #tpu.memory_space<vmem>>, vector<3x16xf32>
    tpu.vector_store %arg7[%c0_7, %c73], %11 {strides = array<i32>} : memref<4x384xf32, #tpu.memory_space<vmem>>, vector<3x16xf32>,
    %13 = vector.extract_strided_slice %4 {offsets = [0, 64], sizes = [3, 16], strides = [1, 1]} : vector<3x256xf32> to vector<3x16xf32>
    %c0_8 = arith.constant 0 : index
    %c91 = arith.constant 91 : index
    %14 = vector.load %arg7[%c0_8, %c91] : memref<4x384xf32, #tpu.memory_space<vmem>>, vector<3x16xf32>
    tpu.vector_store %arg7[%c0_8, %c91], %13 {strides = array<i32>} : memref<4x384xf32, #tpu.memory_space<vmem>>, vector<3x16xf32>,
    %15 = vector.extract_strided_slice %4 {offsets = [0, 80], sizes = [3, 16], strides = [1, 1]} : vector<3x256xf32> to vector<3x16xf32>
    %c0_9 = arith.constant 0 : index
    %c109 = arith.constant 109 : index
    %16 = vector.load %arg7[%c0_9, %c109] : memref<4x384xf32, #tpu.memory_space<vmem>>, vector<3x16xf32>
    tpu.vector_store %arg7[%c0_9, %c109], %15 {strides = array<i32>} : memref<4x384xf32, #tpu.memory_space<vmem>>, vector<3x16xf32>,
    %17 = vector.extract_strided_slice %4 {offsets = [0, 96], sizes = [3, 16], strides = [1, 1]} : vector<3x256xf32> to vector<3x16xf32>
    %c0_10 = arith.constant 0 : index
    %c127 = arith.constant 127 : index
    %18 = vector.load %arg7[%c0_10, %c127] : memref<4x384xf32, #tpu.memory_space<vmem>>, vector<3x16xf32>
    tpu.vector_store %arg7[%c0_10, %c127], %17 {strides = array<i32>} : memref<4x384xf32, #tpu.memory_space<vmem>>, vector<3x16xf32>,
    %19 = vector.extract_strided_slice %4 {offsets = [0, 112], sizes = [3, 16], strides = [1, 1]} : vector<3x256xf32> to vector<3x16xf32>
    %c0_11 = arith.constant 0 : index
    %c145 = arith.constant 145 : index
    %20 = vector.load %arg7[%c0_11, %c145] : memref<4x384xf32, #tpu.memory_space<vmem>>, vector<3x16xf32>
    tpu.vector_store %arg7[%c0_11, %c145], %19 {strides = array<i32>} : memref<4x384xf32, #tpu.memory_space<vmem>>, vector<3x16xf32>,
    %21 = vector.extract_strided_slice %4 {offsets = [0, 128], sizes = [3, 16], strides = [1, 1]} : vector<3x256xf32> to vector<3x16xf32>
    %c0_12 = arith.constant 0 : index
    %c163 = arith.constant 163 : index
    %22 = vector.load %arg7[%c0_12, %c163] : memref<4x384xf32, #tpu.memory_space<vmem>>, vector<3x16xf32>
    tpu.vector_store %arg7[%c0_12, %c163], %21 {strides = array<i32>} : memref<4x384xf32, #tpu.memory_space<vmem>>, vector<3x16xf32>,
    %23 = vector.extract_strided_slice %4 {offsets = [0, 144], sizes = [3, 16], strides = [1, 1]} : vector<3x256xf32> to vector<3x16xf32>
    %c0_13 = arith.constant 0 : index
    %c181 = arith.constant 181 : index
    %24 = vector.load %arg7[%c0_13, %c181] : memref<4x384xf32, #tpu.memory_space<vmem>>, vector<3x16xf32>
    tpu.vector_store %arg7[%c0_13, %c181], %23 {strides = array<i32>} : memref<4x384xf32, #tpu.memory_space<vmem>>, vector<3x16xf32>,
    %25 = vector.extract_strided_slice %4 {offsets = [0, 160], sizes = [3, 16], strides = [1, 1]} : vector<3x256xf32> to vector<3x16xf32>
    %c0_14 = arith.constant 0 : index
    %c199 = arith.constant 199 : index
    %26 = vector.load %arg7[%c0_14, %c199] : memref<4x384xf32, #tpu.memory_space<vmem>>, vector<3x16xf32>
    tpu.vector_store %arg7[%c0_14, %c199], %25 {strides = array<i32>} : memref<4x384xf32, #tpu.memory_space<vmem>>, vector<3x16xf32>,
    %27 = vector.extract_strided_slice %4 {offsets = [0, 176], sizes = [3, 16], strides = [1, 1]} : vector<3x256xf32> to vector<3x16xf32>
    %c0_15 = arith.constant 0 : index
    %c217 = arith.constant 217 : index
    %28 = vector.load %arg7[%c0_15, %c217] : memref<4x384xf32, #tpu.memory_space<vmem>>, vector<3x16xf32>
    tpu.vector_store %arg7[%c0_15, %c217], %27 {strides = array<i32>} : memref<4x384xf32, #tpu.memory_space<vmem>>, vector<3x16xf32>,
    %29 = vector.extract_strided_slice %4 {offsets = [0, 192], sizes = [3, 16], strides = [1, 1]} : vector<3x256xf32> to vector<3x16xf32>
    %c0_16 = arith.constant 0 : index
    %c235 = arith.constant 235 : index
    %30 = vector.load %arg7[%c0_16, %c235] : memref<4x384xf32, #tpu.memory_space<vmem>>, vector<3x16xf32>
    tpu.vector_store %arg7[%c0_16, %c235], %29 {strides = array<i32>} : memref<4x384xf32, #tpu.memory_space<vmem>>, vector<3x16xf32>,
    %31 = vector.extract_strided_slice %4 {offsets = [0, 208], sizes = [3, 16], strides = [1, 1]} : vector<3x256xf32> to vector<3x16xf32>
    %c0_17 = arith.constant 0 : index
    %c253 = arith.constant 253 : index
    %32 = vector.load %arg7[%c0_17, %c253] : memref<4x384xf32, #tpu.memory_space<vmem>>, vector<3x16xf32>
    tpu.vector_store %arg7[%c0_17, %c253], %31 {strides = array<i32>} : memref<4x384xf32, #tpu.memory_space<vmem>>, vector<3x16xf32>,
    %33 = vector.extract_strided_slice %4 {offsets = [0, 224], sizes = [3, 16], strides = [1, 1]} : vector<3x256xf32> to vector<3x16xf32>
    %c0_18 = arith.constant 0 : index
    %c271 = arith.constant 271 : index
    %34 = vector.load %arg7[%c0_18, %c271] : memref<4x384xf32, #tpu.memory_space<vmem>>, vector<3x16xf32>
    tpu.vector_store %arg7[%c0_18, %c271], %33 {strides = array<i32>} : memref<4x384xf32, #tpu.memory_space<vmem>>, vector<3x16xf32>,
    %35 = vector.extract_strided_slice %4 {offsets = [0, 240], sizes = [3, 16], strides = [1, 1]} : vector<3x256xf32> to vector<3x16xf32>
    %c0_19 = arith.constant 0 : index
    %c289 = arith.constant 289 : index
    %36 = vector.load %arg7[%c0_19, %c289] : memref<4x384xf32, #tpu.memory_space<vmem>>, vector<3x16xf32>
    tpu.vector_store %arg7[%c0_19, %c289], %35 {strides = array<i32>} : memref<4x384xf32, #tpu.memory_space<vmem>>, vector<3x16xf32>,
    %c0_20 = arith.constant 0 : index
    %c0_21 = arith.constant 0 : index
    %37 = vector.load %arg7[%c0_20, %c0_21] : memref<4x384xf32, #tpu.memory_space<vmem>>, vector<4x288xf32>
    %38 = arith.truncf %37 : vector<4x288xf32> to vector<4x288xbf16>
    %c0_22 = arith.constant 0 : index
    %c0_23 = arith.constant 0 : index
    %39 = vector.load %arg8[%c0_22, %c0_23] : memref<36x288xbf16, #tpu.memory_space<vmem>>, vector<4x288xbf16>
    tpu.vector_store %arg8[%c0_22, %c0_23], %38 {strides = array<i32>} : memref<36x288xbf16, #tpu.memory_space<vmem>>, vector<4x288xbf16>,
    %c0_24 = arith.constant 0 : index
    %c1 = arith.constant 1 : index
    %40 = vector.load %arg7[%c0_24, %c1] : memref<4x384xf32, #tpu.memory_space<vmem>>, vector<4x288xf32>
    %41 = arith.truncf %40 : vector<4x288xf32> to vector<4x288xbf16>
    %c4 = arith.constant 4 : index
    %c0_25 = arith.constant 0 : index
    %42 = vector.load %arg8[%c4, %c0_25] : memref<36x288xbf16, #tpu.memory_space<vmem>>, vector<4x288xbf16>
    tpu.vector_store %arg8[%c4, %c0_25], %41 {strides = array<i32>} : memref<36x288xbf16, #tpu.memory_space<vmem>>, vector<4x288xbf16>,
    %c0_26 = arith.constant 0 : index
    %c2 = arith.constant 2 : index
    %43 = vector.load %arg7[%c0_26, %c2] : memref<4x384xf32, #tpu.memory_space<vmem>>, vector<4x288xf32>
    %44 = arith.truncf %43 : vector<4x288xf32> to vector<4x288xbf16>
    %c8 = arith.constant 8 : index
    %c0_27 = arith.constant 0 : index
    %45 = vector.load %arg8[%c8, %c0_27] : memref<36x288xbf16, #tpu.memory_space<vmem>>, vector<4x288xbf16>
    tpu.vector_store %arg8[%c8, %c0_27], %44 {strides = array<i32>} : memref<36x288xbf16, #tpu.memory_space<vmem>>, vector<4x288xbf16>,
    %c0_28 = arith.constant 0 : index
    %c18 = arith.constant 18 : index
    %46 = vector.load %arg7[%c0_28, %c18] : memref<4x384xf32, #tpu.memory_space<vmem>>, vector<4x288xf32>
    %47 = arith.truncf %46 : vector<4x288xf32> to vector<4x288xbf16>
    %c12 = arith.constant 12 : index
    %c0_29 = arith.constant 0 : index
    %48 = vector.load %arg8[%c12, %c0_29] : memref<36x288xbf16, #tpu.memory_space<vmem>>, vector<4x288xbf16>
    tpu.vector_store %arg8[%c12, %c0_29], %47 {strides = array<i32>} : memref<36x288xbf16, #tpu.memory_space<vmem>>, vector<4x288xbf16>,
    %c0_30 = arith.constant 0 : index
    %c19_31 = arith.constant 19 : index
    %49 = vector.load %arg7[%c0_30, %c19_31] : memref<4x384xf32, #tpu.memory_space<vmem>>, vector<4x288xf32>
    %50 = arith.truncf %49 : vector<4x288xf32> to vector<4x288xbf16>
    %c16 = arith.constant 16 : index
    %c0_32 = arith.constant 0 : index
    %51 = vector.load %arg8[%c16, %c0_32] : memref<36x288xbf16, #tpu.memory_space<vmem>>, vector<4x288xbf16>
    tpu.vector_store %arg8[%c16, %c0_32], %50 {strides = array<i32>} : memref<36x288xbf16, #tpu.memory_space<vmem>>, vector<4x288xbf16>,
    %c0_33 = arith.constant 0 : index
    %c20 = arith.constant 20 : index
    %52 = vector.load %arg7[%c0_33, %c20] : memref<4x384xf32, #tpu.memory_space<vmem>>, vector<4x288xf32>
    %53 = arith.truncf %52 : vector<4x288xf32> to vector<4x288xbf16>
    %c20_34 = arith.constant 20 : index
    %c0_35 = arith.constant 0 : index
    %54 = vector.load %arg8[%c20_34, %c0_35] : memref<36x288xbf16, #tpu.memory_space<vmem>>, vector<4x288xbf16>
    tpu.vector_store %arg8[%c20_34, %c0_35], %53 {strides = array<i32>} : memref<36x288xbf16, #tpu.memory_space<vmem>>, vector<4x288xbf16>,
    %c0_36 = arith.constant 0 : index
    %c36 = arith.constant 36 : index
    %55 = vector.load %arg7[%c0_36, %c36] : memref<4x384xf32, #tpu.memory_space<vmem>>, vector<4x288xf32>
    %56 = arith.truncf %55 : vector<4x288xf32> to vector<4x288xbf16>
    %c24 = arith.constant 24 : index
    %c0_37 = arith.constant 0 : index
    %57 = vector.load %arg8[%c24, %c0_37] : memref<36x288xbf16, #tpu.memory_space<vmem>>, vector<4x288xbf16>
    tpu.vector_store %arg8[%c24, %c0_37], %56 {strides = array<i32>} : memref<36x288xbf16, #tpu.memory_space<vmem>>, vector<4x288xbf16>,
    %c0_38 = arith.constant 0 : index
    %c37_39 = arith.constant 37 : index
    %58 = vector.load %arg7[%c0_38, %c37_39] : memref<4x384xf32, #tpu.memory_space<vmem>>, vector<4x288xf32>
    %59 = arith.truncf %58 : vector<4x288xf32> to vector<4x288xbf16>
    %c28 = arith.constant 28 : index
    %c0_40 = arith.constant 0 : index
    %60 = vector.load %arg8[%c28, %c0_40] : memref<36x288xbf16, #tpu.memory_space<vmem>>, vector<4x288xbf16>
    tpu.vector_store %arg8[%c28, %c0_40], %59 {strides = array<i32>} : memref<36x288xbf16, #tpu.memory_space<vmem>>, vector<4x288xbf16>,
    %c0_41 = arith.constant 0 : index
    %c38 = arith.constant 38 : index
    %61 = vector.load %arg7[%c0_41, %c38] : memref<4x384xf32, #tpu.memory_space<vmem>>, vector<4x288xf32>
    %62 = arith.truncf %61 : vector<4x288xf32> to vector<4x288xbf16>
    %c32 = arith.constant 32 : index
    %c0_42 = arith.constant 0 : index
    %63 = vector.load %arg8[%c32, %c0_42] : memref<36x288xbf16, #tpu.memory_space<vmem>>, vector<4x288xbf16>
    tpu.vector_store %arg8[%c32, %c0_42], %62 {strides = array<i32>} : memref<36x288xbf16, #tpu.memory_space<vmem>>, vector<4x288xbf16>,
    %c0_43 = arith.constant 0 : index
    %c0_44 = arith.constant 0 : index
    %64 = vector.load %arg3[%c0_43, %c0_44] : memref<32x36xbf16, #tpu.memory_space<vmem>>, vector<32x36xbf16>
    %c0_45 = arith.constant 0 : index
    %c0_46 = arith.constant 0 : index
    %65 = vector.load %arg8[%c0_45, %c0_46] : memref<36x288xbf16, #tpu.memory_space<vmem>>, vector<36x288xbf16>
    %cst = arith.constant dense<0.000000e+00> : vector<32x288xf32>
    %66 = tpu.matmul %64, %65, %cst {dimension_numbers = #tpu.dot_dimension_numbers<[1], [0], [0], [1], [0, 0, 1, 1], [], []>} : vector<32x36xbf16>, vector<36x288xbf16>, vector<32x288xf32> -> vector<32x288xf32>
    %c0_47 = arith.constant 0 : index
    %c0_48 = arith.constant 0 : index
    %67 = vector.load %arg4[%c0_47, %c0_48] : memref<32x1xf32, #tpu.memory_space<vmem>>, vector<32x1xf32>
    %68 = vector.broadcast %67 : vector<32x1xf32> to vector<32x288xf32>
    %69 = arith.addf %66, %68 : vector<32x288xf32>
    %cst_49 = arith.constant 0.000000e+00 : f32
    %70 = vector.broadcast %cst_49 : f32 to vector<32x288xf32>
    %71 = arith.maximumf %69, %70 : vector<32x288xf32>
    %c0_50 = arith.constant 0 : index
    %c0_51 = arith.constant 0 : index
    %72 = vector.load %arg5[%c0_50, %c0_51] : memref<1x288xf32, #tpu.memory_space<vmem>>, vector<1x288xf32>
    %73 = vector.broadcast %72 : vector<1x288xf32> to vector<32x288xf32>
    %74 = arith.mulf %71, %73 : vector<32x288xf32>
    %c0_52 = arith.constant 0 : index
    %c0_53 = arith.constant 0 : index
    %75 = vector.load %arg9[%c0_52, %c0_53] : memref<32x1xf32, #tpu.memory_space<vmem>>, vector<32x1xf32>
    %cst_54 = arith.constant dense<0.000000e+00> : vector<32xf32>
    %76 = vector.multi_reduction <add>, %74, %cst_54 [1] : vector<32x288xf32> to vector<32xf32>
    %77 = vector.shape_cast %76 : vector<32xf32> to vector<32x1xf32>
    %78 = arith.addf %75, %77 : vector<32x1xf32>
    %c0_55 = arith.constant 0 : index
    %c0_56 = arith.constant 0 : index
    %79 = vector.load %arg9[%c0_55, %c0_56] : memref<32x1xf32, #tpu.memory_space<vmem>>, vector<32x1xf32>
    tpu.vector_store %arg9[%c0_55, %c0_56], %78 {strides = array<i32>} : memref<32x1xf32, #tpu.memory_space<vmem>>, vector<32x1xf32>,
    %c3_i32 = arith.constant 3 : i32
    %80 = arith.cmpi eq, %arg1, %c3_i32 : i32
    %81 = arith.extui %80 : i1 to i32
    %c0_i32_57 = arith.constant 0 : i32
    %82 = arith.cmpi ne, %81, %c0_i32_57 : i32
    scf.if %82 {
      %c0_58 = arith.constant 0 : index
      %c0_59 = arith.constant 0 : index
      %83 = vector.load %arg9[%c0_58, %c0_59] : memref<32x1xf32, #tpu.memory_space<vmem>>, vector<32x1xf32>
      %cst_60 = arith.constant 9.765625E-4 : f32
      %84 = vector.broadcast %cst_60 : f32 to vector<32x1xf32>
      %85 = arith.mulf %83, %84 : vector<32x1xf32>
      %86 = tpu.transpose %85, [1, 0] : vector<32x1xf32> -> vector<1x32xf32>
      %c0_61 = arith.constant 0 : index
      %c0_62 = arith.constant 0 : index
      %c0_63 = arith.constant 0 : index
      %87 = vector.load %arg6[%c0_61, %c0_62, %c0_63] : memref<1x1x32xf32, #tpu.memory_space<vmem>>, vector<1x1x32xf32>
      %88 = vector.shape_cast %87 : vector<1x1x32xf32> to vector<1x32xf32>
      %89 = vector.shape_cast %86 : vector<1x32xf32> to vector<1x1x32xf32>
      tpu.vector_store %arg6[%c0_61, %c0_62, %c0_63], %89 {strides = array<i32>} : memref<1x1x32xf32, #tpu.memory_space<vmem>>, vector<1x1x32xf32>,
    } else {
    }
    return
  }
  func.func @transform_0(%arg0: i32, %arg1: i32) -> (i32, i32, i32, i32) {
    %c0_i32 = arith.constant 0 : i32
    %c0_i32_0 = arith.constant 0 : i32
    %c0_i32_1 = arith.constant 0 : i32
    return %arg0, %arg1, %c0_i32, %c0_i32_0 : i32, i32, i32, i32
  }
  func.func @transform_1(%arg0: i32, %arg1: i32) -> (i32, i32) {
    %c0_i32 = arith.constant 0 : i32
    %c0_i32_0 = arith.constant 0 : i32
    %c0_i32_1 = arith.constant 0 : i32
    return %c0_i32, %c0_i32_0 : i32, i32
  }
  func.func @transform_2(%arg0: i32, %arg1: i32) -> (i32, i32) {
    %c0_i32 = arith.constant 0 : i32
    %c0_i32_0 = arith.constant 0 : i32
    %c0_i32_1 = arith.constant 0 : i32
    return %c0_i32, %c0_i32_0 : i32, i32
  }
  func.func @transform_3(%arg0: i32, %arg1: i32) -> (i32, i32) {
    %c0_i32 = arith.constant 0 : i32
    %c0_i32_0 = arith.constant 0 : i32
    %c0_i32_1 = arith.constant 0 : i32
    return %c0_i32, %c0_i32_0 : i32, i32
  }
  func.func @transform_4(%arg0: i32, %arg1: i32) -> (i32, i32, i32) {
    %c0_i32 = arith.constant 0 : i32
    %c0_i32_0 = arith.constant 0 : i32
    %c0_i32_1 = arith.constant 0 : i32
    return %arg0, %c0_i32, %c0_i32_0 : i32, i32, i32
  }
}

</mosaic_0001>

<bundles_post_ra>
// kernel: tsn_forward.1
= control target key start
LH: loop header
LB: loop body
LE: loop exit
PB: predicated region body
PF: predicated region fallthrough
CT: control target
= control target key end

     0   :  { %s1253_s15 = smov 0   ;;  %s1255_s16 = smov 0   ;;  %s1373_s0 = inlined_call_operand.vmem [shape: f32[2,4,3,256], index: 0, kind: input, shape index: {}]   ;;  %s1374_s1 = inlined_call_operand.vmem [shape: bf16[32,36], index: 1, kind: input, shape index: {}]   ;;  %s1375_s2 = inlined_call_operand.vmem [shape: f32[32,1], index: 2, kind: input, shape index: {}]   ;;  %s1376_s3 = inlined_call_operand.vmem [shape: f32[1,288], index: 3, kind: input, shape index: {}]   ;;  %s1377_s4 = inlined_call_operand.vmem [shape: f32[2,1,32], index: 4, kind: output, shape index: {}]  }
   0x1   :  { %s1257_s17 = smov 0   ;;  %s1259_s18 = smov 0  }
   0x2   :  { %s1261_s19 = smov 0  }
   0x3 LB: > { %s23_s20 = sadd.s32 1, %s1192_s17  ;;  %s26_s21 = sadd.s32 1, %s1196_s18  ;;  %s1200_s19 = sphi %s1261_s19, %s14_s19   ;;  %s1196_s18 = sphi %s1259_s18, %s1381_s18   ;;  %s1192_s17 = sphi %s1257_s17, %s1380_s17   ;;  %s1188_s16 = sphi %s1255_s16, %s1379_s16   ;;  %s1184_s15 = sphi %s1253_s15, %s1378_s15  }
   0x4   : > { %p24_p0 = scmp.ge.s32.totalorder %s23_s20, 4  ;;  %p1003_p1 = scmp.ge.s32.totalorder %s1200_s19, 1 }
   0x5   : > { %p180_p2 = scmp.lt.s32.totalorder %s1200_s19, 9 }
   0x6   : > { %s1383_s20 = smov (%p24_p0, %s23_s20), 0  ;;  %s1385_s21 = smov (!%p24_p0, %s26_s21), %s1196_s18 }
   0x7   : > { %p181_p3 = pnand %p1003_p1, %p180_p2  ;;  %p28_p4 = scmp.ge.s32.totalorder %s1385_s21, 2 }
   0x8   : > { %p208_p5 = scmp.lt.s32.totalorder (!%p181_p3), %s1188_s16, 1  ;;  %p210_p6 = scmp.lt.s32.totalorder (!%p181_p3), %s1184_s15, 3 }
   0x9   : > { %s1387_s21 = smov (%p28_p4, %s1385_s21), 0  ;;  %184 = sbr.rel (%p181_p3) target bundleno = 848 (0x350), region = 36 }
   0xa   : > { %p1007_p7 = scmp.ne.s32.totalorder (!%p181_p3), %s1184_s15, 0 }
  0x10   : > { %s1389_s16 = smov (!%p208_p5, %s1188_s16), 1  ;;  %224 = sbr.rel (%p1007_p7) target bundleno = 23 (0x17), region = 40 }
  0x11   : > { %s211_s22 = scalar_select %p210_p6, %s1184_s15, 3 }
  0x12   : > { %s1005_s23 = sshll.u32 %s1389_s16, 3  ;;  %s219_s26 = scalar_lea.vmem %s1377_s4, %s1389_s16  ;;  %vm227_vm0 = vcmask (!%p1007_p7), 7168   ;;  %v1202_v0 = vmov (!%p1007_p7), 0.0  }
  0x13   : > { %s1004_s27 = sshll.u32 %s211_s22, 1  ;;  %225 = vst [vmem:[#allocation2] sm:$0xff] (!%p1007_p7), %v1202_v0  ;;  %226 = vst [vmem:[#allocation2 + $0x8] sm:$0xf] (!%p1007_p7), %v1202_v0 }
  0x14   : > { %s214_s28 = sadd.s32 %s1005_s23, %s1004_s27  ;;  %228 = vst.msk [vmem:[#allocation4] sm:$0xff] (!%p1007_p7), %vm227_vm0, %v1202_v0  ;;  %229 = vst.msk [vmem:[#allocation4 + $0x8] sm:$0xff] (!%p1007_p7), %vm227_vm0, %v1202_v0 }
  0x15   : > { %s1006_s29 = sshll.u32 %s214_s28, 2  ;;  %230 = vst.msk [vmem:[#allocation4 + $0x10] sm:$0xff] (!%p1007_p7), %vm227_vm0, %v1202_v0  ;;  %231 = vst.msk [vmem:[#allocation4 + $0x18] sm:$0xff] (!%p1007_p7), %vm227_vm0, %v1202_v0 }
  0x16   : > { %s216_s6 = scalar_lea.vmem %s1373_s0, %s1006_s29 }
  0x17 PF: > { %v232_v1 = vld [vmem:[%s216_s6] sm:$0x77]  ;;  %s1203_s7 = smov 23   ;;  %s1204_s8 = smov 19   ;;  %vm237_vm1 = vcmask 280728   ;;  %vm242_vm2 = vcmask 428328  }
  0x18   : > { %244 = vrot.lane.b32.xlu1 %v232_v1, %s1203_s7  ;;  %234 = vrot.lane.b32.xlu0 %v232_v1, %s1204_s8  ;;  %s1205_s9 = smov 25   ;;  %s1206_s10 = smov 21   ;;  %vm247_vm3 = vcmask 575928   ;;  %vm252_vm4 = vcmask 723528   ;;  %vm257_vm5 = vcmask 871128   ;;  %vm270_vm6 = vcmask 1043448  }
  0x19   : > { %s1207_s11 = smov 27   ;;  %s1208_s12 = smov 31   ;;  %vm271_vm7 = vcmask 120836   ;;  %vm267_vm8 = vcmask 252928   ;;  %vm262_vm9 = vcmask 1018728   ;;  %vm282_vm11 = vcmask 285696  }
  0x1a   : > { %s1209_s13 = smov 35   ;;  %s1210_s14 = smov 29   ;;  %vm272_vm10 = vmor %vm271_vm7, %vm270_vm6  ;;  %vm277_vm12 = vcmask 264328   ;;  %vm285_vm13 = vcmask 411928   ;;  %vm290_vm14 = vcmask 302080   ;;  %vm293_vm15 = vcmask 559528  }
  0x1b   : > { %s1211_s22 = smov 33   ;;  %s1212_s23 = smov 37   ;;  %vm306_vm0 = vcmask 334848   ;;  %vm322_vm6 = vcmask 367616   ;;  %vm314_vm7 = vcmask 351232   ;;  %v1302_v60 = vld [vmem:[%s1374_s1] sm:$0xff]  }
  0x1c   : > { %249 = vrot.lane.b32.xlu1 %v232_v1, %s1205_s9  ;;  %239 = vrot.lane.b32.xlu0 %v232_v1, %s1206_s10  ;;  %s1213_s24 = smov 41   ;;  %s1214_s25 = smov 39   ;;  %v1227_v61 = vmov 0   ;;  %v618_v62 = vld [vmem:[%s1375_s2] sm:$0xff]  ;;  %v619_v63 = vld [vmem:[%s1375_s2 + $0x8] sm:$0xff] }
  0x1d   : > { %s1215_s27 = smov 45   ;;  %s1216_s28 = smov 43   ;;  %741 = vmatprep.mubr.bf16.mxu0 %v1227_v61  ;;  %1146 = vset.pattern.permute.xlu0 %v1227_v61  ;;  %v621_v0 = vld [vmem:[%s1375_s2 + $0x18] sm:$0xff] }
  0x1e   : > { %s1217_s29 = smov 47   ;;  %s1218_s30 = smov 49   ;;  %1147 = vset.pattern.permute.xlu1 %v1227_v61 }
  0x1f   : > { %s1219_s5 = smov 126   ;;  %s1220_s6 = smov 109  }
  0x20   : > { %254 = vrot.lane.b32.xlu1 %v232_v1, %s1207_s11  ;;  %264 = vrot.lane.b32.xlu0 %v232_v1, %s1208_s12  ;;  %s1221_s7 = smov 92   ;;  %s1222_s8 = smov 127  }
  0x21   : > { %s1223_s9 = smov 110   ;;  %s1224_s10 = smov 108  }
  0x22   : > { %s1225_s11 = smov 91   ;;  %s1226_s12 = smov 90  }
  0x23   : > { %p1042_p8 = scmp.ne.s32.totalorder %s1184_s15, 3 }
  0x24   : > { %279 = vrot.lane.b32.xlu1 %v232_v1, %s1209_s13  ;;  %259 = vrot.lane.b32.xlu0 %v232_v1, %s1210_s14 }
  0x28   : > { %274 = vrot.lane.b32.xlu1 %v232_v1, %s1211_s22  ;;  %287 = vrot.lane.b32.xlu0 %v232_v1, %s1212_s23 }
  0x2c   : > { %303 = vrot.lane.b32.xlu1 %v232_v1, %s1213_s24  ;;  %295 = vrot.lane.b32.xlu0 %v232_v1, %s1214_s25 }
  0x30   : > { %319 = vrot.lane.b32.xlu1 %v232_v1, %s1215_s27  ;;  %311 = vrot.lane.b32.xlu0 %v232_v1, %s1216_s28 }
  0x34   : > { %329 = vrot.lane.b32.xlu0 %v232_v1, %s1217_s29  ;;  %335 = vrot.lane.b32.xlu1 %v232_v1, %s1218_s30  ;;  %v620_v1 = vld [vmem:[%s1375_s2 + $0x10] sm:$0xff] }
  0x8a   : > { %v245_v2 = vpop.permute.xlu1 %244  ;;  %v235_v3 = vpop.permute.xlu0 %234 }
  0x8b   : > { %238 = vst.msk [vmem:[#allocation2] sm:$0x7] %vm237_vm1, %v235_v3  ;;  %vm298_vm1 = vcmask 318464  }
  0x8e   : > { %v250_v4 = vpop.permute.xlu1 %249  ;;  %v240_v5 = vpop.permute.xlu0 %239 }
  0x8f   : > { %243 = vst.msk [vmem:[#allocation2] sm:$0x7] %vm242_vm2, %v240_v5  ;;  %vm301_vm2 = vcmask 707128  }
  0x90   : > { %248 = vst.msk [vmem:[#allocation2] sm:$0x7] %vm247_vm3, %v245_v2  ;;  %vm309_vm3 = vcmask 854728  }
  0x91   : > { %253 = vst.msk [vmem:[#allocation2] sm:$0x7] %vm252_vm4, %v250_v4  ;;  %vm325_vm4 = vcmask 1043432  }
  0x92   : > { %v255_v6 = vpop.permute.xlu1 %254  ;;  %v265_v7 = vpop.permute.xlu0 %264 }
  0x93   : > { %258 = vst.msk [vmem:[#allocation2] sm:$0x7] %vm257_vm5, %v255_v6  ;;  %v266_v8 = vrot.slane %v265_v7, 4  ;;  %vm326_vm5 = vcmask 104452  }
  0x95   : > { %v268_v11 = vsel %vm267_vm8, %v266_v8, %v265_v7  ;;  %vm317_vm8 = vcmask 1002328  }
  0x96   : > { %v280_v9 = vpop.permute.xlu1 %279  ;;  %v260_v10 = vpop.permute.xlu0 %259 }
  0x97   : > { %v281_v12 = vrot.slane %v280_v9, 4  ;;  %263 = vst.msk [vmem:[#allocation2] sm:$0x7] %vm262_vm9, %v260_v10  ;;  %vm327_vm9 = vmor %vm326_vm5, %vm325_vm4  ;;  %vm449_vm4 = vcmask 900096   ;;  %vm509_vm5 = vcmask 883712  }
  0x98   : > { %273 = vst.msk [vmem:[#allocation2] sm:$0x77] %vm272_vm10, %v268_v11  ;;  %vm333_vm10 = vcmask 247928  }
  0x99   : > { %v283_v15 = vsel %vm282_vm11, %v280_v9, %v281_v12  ;;  %vm339_vm11 = vcmask 395528  }
  0x9a   : > { %v275_v13 = vpop.permute.xlu1 %274  ;;  %v288_v14 = vpop.permute.xlu0 %287 }
  0x9b   : > { %278 = vst.msk [vmem:[#allocation2 + $0x4] sm:$0x7] %vm277_vm12, %v275_v13  ;;  %v289_v16 = vrot.slane %v288_v14, 4  ;;  %vm360_vm12 = vcmask 254976  }
  0x9c   : > { %286 = vst.msk [vmem:[#allocation2 + $0x4] sm:$0x7] %vm285_vm13, %v283_v15  ;;  %vm692_vm13 = vcmask 293888  }
  0x9d   : > { %v291_v17 = vsel %vm290_vm14, %v288_v14, %v289_v16  ;;  %1074 = vmatprep.mubr.msk.bf16.mxu1 %vm692_vm13, %v1302_v60  ;;  %vm386_vm14 = vcmask 1043456  }
  0x9e   : > { %294 = vst.msk [vmem:[#allocation2 + $0x4] sm:$0x7] %vm293_vm15, %v291_v17  ;;  %v304_v18 = vpop.permute.xlu1 %303  ;;  %v296_v19 = vpop.permute.xlu0 %295  ;;  %vm418_vm15 = vcmask 1031168  }
  0x9f   : > { %v305_v20 = vrot.slane %v304_v18, 4  ;;  %v297_v21 = vrot.slane %v296_v19, 4 }
  0xa1   : > { %v307_v22 = vsel %vm306_vm0, %v304_v18, %v305_v20  ;;  %v299_v23 = vsel %vm298_vm1, %v296_v19, %v297_v21  ;;  %vm478_vm0 = vcmask 891904   ;;  %vm538_vm1 = vcmask 752640  }
  0xa2   : > { %302 = vst.msk [vmem:[#allocation2 + $0x4] sm:$0x7] %vm301_vm2, %v299_v23  ;;  %v320_v24 = vpop.permute.xlu1 %319  ;;  %v312_v25 = vpop.permute.xlu0 %311  ;;  %vm393_vm2 = vcmask 257026  }
  0xa3   : > { %v321_v26 = vrot.slane %v320_v24, 4  ;;  %310 = vst.msk [vmem:[#allocation2 + $0x4] sm:$0x7] %vm309_vm3, %v307_v22  ;;  %v313_v27 = vrot.slane %v312_v25, 4  ;;  %vm388_vm3 = vcmask 1039360  }
  0xa5   : > { %v323_v28 = vsel %vm322_vm6, %v320_v24, %v321_v26  ;;  %v315_v29 = vsel %vm314_vm7, %v312_v25, %v313_v27  ;;  %vm569_vm6 = vcmask 744448   ;;  %vm598_vm7 = vcmask 736256  }
  0xa6   : > { %318 = vst.msk [vmem:[#allocation2 + $0x4] sm:$0x7] %vm317_vm8, %v315_v29  ;;  %v330_v30 = vpop.permute.xlu0 %329  ;;  %v336_v31 = vpop.permute.xlu1 %335  ;;  %vm699_vm8 = vcmask 1041408  }
  0xa7   : > { %328 = vst.msk [vmem:[#allocation2 + $0x4] sm:$0x77] %vm327_vm9, %v323_v28  ;;  %v331_v32 = vrot.slane %v330_v30, 4  ;;  %v337_v33 = vrot.slane %v336_v31, 4  ;;  %vm857_vm9 = vcmask 261120  }
  0xa9   : > { %334 = vst.msk [vmem:[#allocation2 + $0x8] sm:$0x7] %vm333_vm10, %v331_v32  ;;  %vm881_vm10 = vcmask 7168  }
  0xaa   : > { %340 = vst.msk [vmem:[#allocation2 + $0x8] sm:$0x7] %vm339_vm11, %v337_v33  ;;  %vm930_vm11 = vcmask (!%p1042_p8), 253952  }
  0xae   : > { %v395_v34 = vld [vmem:[#allocation2] sm:$0xff] }
  0xaf   : > { %v398_v35 = vcombine.high %v395_v34, %v395_v34 }
  0xb1   : > { %v1049_v36 = vpack.c.bf16 %v398_v35, %v395_v34  ;;  %v396_v37 = vld [vmem:[#allocation2 + $0x8] sm:$0xf] }
  0xb2   : > { %v1050_v38 = vpack.c.bf16 %v396_v37, %v396_v37  ;;  %v456_v39 = vld [vmem:[#allocation2 + $0x8] sm:$0xf] }
  0xb3   : > { %411 = vrot.lane.b32.xlu0 %v1049_v36, %s1219_s5  ;;  %359 = vst [vmem:[#allocation3] sm:$0x33] %v1049_v36  ;;  %v342_v40 = vld [vmem:[#allocation2 + $0x8] sm:$0xf]  ;;  %v1054_v42 = vpack.c.bf16 %v456_v39, %v456_v39  ;;  %v378_v48 = vrot.slane %v1049_v36, 6 }
  0xb4   : > { %413 = vrot.lane.b32.xlu1 %v1050_v38, %s1219_s5  ;;  %v1046_v41 = vpack.c.bf16 %v342_v40, %v342_v40  ;;  %v516_v43 = vld [vmem:[#allocation2 + $0x8] sm:$0xf] }
  0xb5   : > { %v363_v44 = vld [vmem:[#allocation2 + $0x8] sm:$0xf]  ;;  %v1058_v45 = vpack.c.bf16 %v516_v43, %v516_v43 }
  0xb6   : > { %361 = vst.msk [vmem:[#allocation3 + $0x8] sm:$0x3] %vm360_vm12, %v1046_v41  ;;  %v1048_v46 = vpack.c.bf16 %v363_v44, %v363_v44  ;;  %v425_v47 = vld [vmem:[#allocation2 + $0x8] sm:$0xf] }
  0xb7   : > { %471 = vrot.lane.b32.xlu0 %v1049_v36, %s1220_s6  ;;  %v1052_v50 = vpack.c.bf16 %v425_v47, %v425_v47  ;;  %v485_v51 = vld [vmem:[#allocation2 + $0x8] sm:$0xf] }
  0xb8   : > { %473 = vrot.lane.b32.xlu1 %v1054_v42, %s1220_s6  ;;  %v379_v49 = vrot.slane %v1048_v46, 6  ;;  %v1056_v53 = vpack.c.bf16 %v485_v51, %v485_v51  ;;  %v545_v54 = vld [vmem:[#allocation2 + $0x8] sm:$0xf] }
  0xb9   : > { %v441_v52 = vrot.slane %v1052_v50, 6  ;;  %v1060_v56 = vpack.c.bf16 %v545_v54, %v545_v54  ;;  %v576_v58 = vld [vmem:[#allocation2 + $0x8] sm:$0xf] }
  0xba   : > { %v501_v55 = vrot.slane %v1056_v53, 6  ;;  %v1062_v59 = vpack.c.bf16 %v576_v58, %v576_v58  ;;  %v1161_v58 = vld [vmem:[%s1374_s1 + $0x8] sm:$0xff]  }
  0xbb   : > { %531 = vrot.lane.b32.xlu0 %v1049_v36, %s1221_s7  ;;  %v561_v57 = vrot.slane %v1060_v56, 6 }
  0xbc   : > { %533 = vrot.lane.b32.xlu1 %v1058_v45, %s1221_s7 }
  0xbf   : > { %380 = vrot.lane.b32.xlu0 %v378_v48, %s1222_s8 }
  0xc0   : > { %382 = vrot.lane.b32.xlu1 %v379_v49, %s1222_s8 }
  0xc3   : > { %442 = vrot.lane.b32.xlu0 %v378_v48, %s1223_s9 }
  0xc4   : > { %444 = vrot.lane.b32.xlu1 %v441_v52, %s1223_s9 }
  0xc7   : > { %502 = vrot.lane.b32.xlu0 %v378_v48, %s1224_s10 }
  0xc8   : > { %504 = vrot.lane.b32.xlu1 %v501_v55, %s1224_s10 }
  0xcb   : > { %562 = vrot.lane.b32.xlu0 %v378_v48, %s1225_s11 }
  0xcc   : > { %564 = vrot.lane.b32.xlu1 %v561_v57, %s1225_s11 }
  0xcf   : > { %591 = vrot.lane.b32.xlu0 %v1049_v36, %s1226_s12 }
  0xd0   : > { %593 = vrot.lane.b32.xlu1 %v1062_v59, %s1226_s12 }
  0xd3   : > { %624 = vperm.xlu0 %1146, %v618_v62  }
  0xd4   : > { %629 = vperm.xlu1 %1147, %v619_v63  }
  0xd7   : > { %639 = vperm.xlu0 %1146, %v621_v0  }
  0xd8   : > { %634 = vperm.xlu1 %1147, %v620_v1   ;;  %v825_v1 = vlaneseq }
 0x125   : > { %v412_v2 = vpop.permute.xlu0 %411 }
 0x126   : > { %v415_v3 = vrot.slane %v412_v2, 4  ;;  %v414_v4 = vpop.permute.xlu1 %413 }
 0x127   : > { %v416_v5 = vrot.slane %v414_v4, 4  ;;  %423 = vst.msk [vmem:[#allocation3 + $0x14] sm:$0x3] %vm360_vm12, %v414_v4 }
 0x129   : > { %v417_v6 = vsel %vm386_vm14, %v415_v3, %v416_v5  ;;  %v472_v7 = vpop.permute.xlu0 %471 }
 0x12a   : > { %v419_v8 = vsel %vm418_vm15, %v412_v2, %v417_v6  ;;  %v475_v9 = vrot.slane %v472_v7, 4  ;;  %v474_v10 = vpop.permute.xlu1 %473  ;;  %v826_v2 = vshrl.u32 %v825_v1, 7 }
 0x12b   : > { %422 = vst [vmem:[#allocation3 + $0xc] sm:$0x33] %v419_v8  ;;  %v476_v11 = vrot.slane %v474_v10, 4  ;;  %483 = vst.msk [vmem:[#allocation3 + $0x20] sm:$0x3] %vm360_vm12, %v474_v10 }
 0x12c   : > { %v835_v3 = vsub.s32 2, %v826_v2  ;;  %v831_v10 = vsub.s32 1, %v826_v2 }
 0x12d   : > { %v477_v12 = vsel %vm386_vm14, %v475_v9, %v476_v11  ;;  %v532_v13 = vpop.permute.xlu0 %531  ;;  %v823_v9 = vld [vmem:[%s1376_s3] sm:$0x7] }
 0x12e   : > { %v479_v14 = vsel %vm478_vm0, %v472_v7, %v477_v12  ;;  %v535_v15 = vrot.slane %v532_v13, 4  ;;  %v534_v16 = vpop.permute.xlu1 %533  ;;  %v827_v7 = vsub.s32 0, %v826_v2 }
 0x12f   : > { %482 = vst [vmem:[#allocation3 + $0x18] sm:$0x33] %v479_v14  ;;  %v536_v17 = vrot.slane %v534_v16, 4  ;;  %543 = vst.msk [vmem:[#allocation3 + $0x2c] sm:$0x3] %vm360_vm12, %v534_v16 }
 0x131   : > { %v537_v18 = vsel %vm386_vm14, %v535_v15, %v536_v17  ;;  %v381_v19 = vpop.permute.xlu0 %380 }
 0x132   : > { %v539_v20 = vsel %vm538_vm1, %v532_v13, %v537_v18  ;;  %v384_v21 = vrot.slane %v381_v19, 4  ;;  %v383_v22 = vpop.permute.xlu1 %382  ;;  %v828_v18 = vrot.slane %v823_v9, %v827_v7 }
 0x133   : > { %542 = vst [vmem:[#allocation3 + $0x24] sm:$0x33] %v539_v20  ;;  %v385_v23 = vrot.slane %v383_v22, 4  ;;  %394 = vst.msk [vmem:[#allocation3 + $0x8] sm:$0xc] %vm393_vm2, %v383_v22  ;;  %v832_v20 = vrot.slane %v823_v9, %v831_v10  ;;  %v852_v10 = vld [vmem:[#allocation4] sm:$0xff] }
 0x135   : > { %v387_v24 = vsel %vm386_vm14, %v384_v21, %v385_v23  ;;  %v443_v25 = vpop.permute.xlu0 %442 }
 0x136   : > { %v389_v26 = vsel %vm388_vm3, %v381_v19, %v387_v24  ;;  %v446_v27 = vrot.slane %v443_v25, 4  ;;  %v445_v28 = vpop.permute.xlu1 %444 }
 0x137   : > { %392 = vst [vmem:[#allocation3] sm:$0xcc] %v389_v26  ;;  %v447_v29 = vrot.slane %v445_v28, 4  ;;  %454 = vst.msk [vmem:[#allocation3 + $0x14] sm:$0xc] %vm393_vm2, %v445_v28 }
 0x139   : > { %v448_v30 = vsel %vm386_vm14, %v446_v27, %v447_v29  ;;  %v503_v31 = vpop.permute.xlu0 %502 }
 0x13a   : > { %v450_v32 = vsel %vm449_vm4, %v443_v25, %v448_v30  ;;  %v506_v33 = vrot.slane %v503_v31, 4  ;;  %v505_v34 = vpop.permute.xlu1 %504 }
 0x13b   : > { %453 = vst [vmem:[#allocation3 + $0xc] sm:$0xcc] %v450_v32  ;;  %v507_v35 = vrot.slane %v505_v34, 4  ;;  %514 = vst.msk [vmem:[#allocation3 + $0x20] sm:$0xc] %vm393_vm2, %v505_v34 }
 0x13d   : > { %v508_v36 = vsel %vm386_vm14, %v506_v33, %v507_v35  ;;  %v563_v37 = vpop.permute.xlu0 %562 }
 0x13e   : > { %v510_v38 = vsel %vm509_vm5, %v503_v31, %v508_v36  ;;  %v566_v39 = vrot.slane %v563_v37, 4  ;;  %v565_v40 = vpop.permute.xlu1 %564  ;;  %v1149_v41 = vld [vmem:[#allocation3 + $0x8] ss:$12 sps:$4 sm:$0xff]  }
 0x13f   : > { %513 = vst [vmem:[#allocation3 + $0x18] sm:$0xcc] %v510_v38  ;;  %v567_v42 = vrot.slane %v565_v40, 4  ;;  %574 = vst.msk [vmem:[#allocation3 + $0x2c] sm:$0xc] %vm393_vm2, %v565_v40  ;;  %1068 = vmatprep.subr.bf16.mxu1 %v1149_v41 }
 0x140   : > { %1069 = vmatpush3.bf16.msra.mxu1 %v1149_v41 }
 0x141   : > { %v568_v43 = vsel %vm386_vm14, %v566_v39, %v567_v42  ;;  %v592_v44 = vpop.permute.xlu0 %591 }
 0x142   : > { %v570_v45 = vsel %vm569_vm6, %v563_v37, %v568_v43  ;;  %v595_v46 = vrot.slane %v592_v44, 4  ;;  %v594_v47 = vpop.permute.xlu1 %593  ;;  %v1150_v48 = vld [vmem:[#allocation3 + $0x4] ss:$12 sps:$4 sm:$0xff]   ;;  %v1152_v49 = vld [vmem:[#allocation3] ss:$12 sps:$4 sm:$0xff]  }
 0x143   : > { %573 = vst [vmem:[#allocation3 + $0x24] sm:$0xcc] %v570_v45  ;;  %v596_v50 = vrot.slane %v594_v47, 4  ;;  %603 = vst.msk [vmem:[#allocation3 + $0x38] sm:$0x3] %vm360_vm12, %v594_v47  ;;  %709 = vmatprep.subr.bf16.mxu0 %v1150_v48 }
 0x144   : > { %710 = vmatpush1.bf16.msra.mxu0 %v1152_v49 }
 0x145   : > { %v597_v51 = vsel %vm386_vm14, %v595_v46, %v596_v50 }
 0x146   : > { %v599_v52 = vsel %vm598_vm7, %v592_v44, %v597_v51  ;;  %v1153_v53 = vld [vmem:[#allocation3 + $0x20] ss:$12 sps:$4 sm:$0xff]  }
 0x147   : > { %602 = vst [vmem:[#allocation3 + $0x30] sm:$0x33] %v599_v52  ;;  %1070 = vmatprep.subr.bf16.mxu1 %v1153_v53 }
 0x148   : > { %1071 = vmatpush3.bf16.msra.mxu1 %v1153_v53 }
 0x14a   : > { %v1154_v54 = vld [vmem:[#allocation3 + $0x1c] ss:$12 sps:$4 sm:$0xff]   ;;  %v1156_v55 = vld [vmem:[#allocation3 + $0x38] ss:$0 sps:$4 sm:$0x33]  }
 0x14b   : > { %v1157_v56 = vld [vmem:[#allocation3 + $0x18] ss:$12 sps:$4 sm:$0xff]   ;;  %711 = vmatprep.subr.bf16.mxu0 %v1154_v54  ;;  %1078 = vmatprep.subr.msk.bf16.mxu1 %vm699_vm8, %v1156_v55  ;;  %v707_v57 = vsel %vm699_vm8, %v1156_v55, 0 }
 0x14c   : > { %712 = vmatpush1.bf16.msra.mxu0 %v1157_v56  ;;  %1073 = vmatpush3.bf16.msra.mxu1 %v707_v57 }
 0x14e   : > { %v616_v59 = vld [vmem:[#allocation3 + $0x30] sm:$0x33] }
 0x14f   : > { %v1035_v62 = vcombine.high %v616_v59, %v616_v59  ;;  %v1034_v63 = vcombine.low %v616_v59, %v616_v59  ;;  %1075 = vmatmul.mubr.msk.bf16.vlgmr.msra.gmra.mrb[0].mxu1 %vm692_vm13, %v1161_v58 }
 0x151   : > { %1037 = vmatprep.subr.msk.bf16.mxu0 %vm699_vm8, %v1035_v62  ;;  %v701_v0 = vsel %vm699_vm8, %v1034_v63, 0 }
 0x152   : > { %714 = vmatpush1.bf16.msra.mxu0 %v701_v0  ;;  %v625_v6 = vpop.permute.xlu0 %624 }
 0x153   : > { %v630_v4 = vpop.permute.xlu1 %629 }
 0x155   : > { %1038 = vmatmul.mubr.msk.bf16.vlgmr.msra.gmra.mrb[0].mxu0 %vm692_vm13, %v1302_v60  ;;  %v836_v60 = vrot.slane %v823_v9, %v835_v3 }
 0x156   : > { %751 = vmatprep.mubr.bf16.mxu0 %v1227_v61  ;;  %v640_v30 = vpop.permute.xlu0 %639 }
 0x157   : > { %v635_v23 = vpop.permute.xlu1 %634 }
 0x15d   : > { %1039 = vmatmul.mubr.msk.bf16.gmra.mrb[4].mxu0 %vm692_vm13, %v1161_v58 }
 0x222   : > { %v1076_v5 = vpop.f32.mrb[0].mxu1 }
 0x223   : > { %v796_v8 = vpop.f32.mrb[1].mxu1  ;;  %v805_v33 = vadd.f32 %v1076_v5, %v635_v23 }
 0x224   : > { %v797_v11 = vadd.f32 %v796_v8, %v625_v6  ;;  %v1077_v12 = vpop.f32.mrb[2].mxu1 }
 0x225   : > { %v799_v13 = vpop.f32.mrb[3].mxu1  ;;  %v808_v38 = vadd.f32 %v1077_v12, %v640_v30  ;;  %v819_v43 = vmax.f32 %v805_v33, 0.0  ;;  %v853_v12 = vld [vmem:[#allocation4 + $0x8] sm:$0xff] }
 0x226   : > { %v813_v14 = vmax.f32 %v797_v11, 0.0  ;;  %v800_v15 = vadd.f32 %v799_v13, %v630_v4 }
 0x227   : > { %v822_v51 = vmax.f32 %v808_v38, 0.0  ;;  %v848_v62 = vmul.f32 %v836_v60, %v819_v43 }
 0x228   : > { %v743_v61 = vpop.f32.mrb[0].mxu0  ;;  %v816_v22 = vmax.f32 %v800_v15, 0.0  ;;  %v842_v26 = vmul.f32 %v836_v60, %v813_v14 }
 0x229   : > { %v744_v16 = vadd.f32 %v743_v61, %v625_v6  ;;  %v745_v17 = vpop.f32.mrb[1].mxu0  ;;  %v851_v2 = vmul.f32 %v836_v60, %v822_v51  ;;  %v868_v5 = vsel %vm857_vm9, %v848_v62, 0.0 }
 0x22a   : > { %v746_v19 = vadd.f32 %v745_v17, %v625_v6  ;;  %v747_v21 = vpop.f32.mrb[2].mxu0  ;;  %v845_v32 = vmul.f32 %v836_v60, %v816_v22  ;;  %v858_v39 = vsel %vm857_vm9, %v842_v26, 0.0  ;;  %v854_v60 = vld [vmem:[#allocation4 + $0x10] sm:$0xff] }
 0x22b   : > { %v811_v24 = vmax.f32 %v744_v16, 0.0  ;;  %v748_v25 = vadd.f32 %v747_v21, %v630_v4  ;;  %v749_v27 = vpop.f32.mrb[3].mxu0  ;;  %v873_v8 = vsel %vm857_vm9, %v851_v2, 0.0  ;;  %v855_v16 = vld [vmem:[#allocation4 + $0x18] sm:$0xff] }
 0x22c   : > { %v812_v28 = vmax.f32 %v746_v19, 0.0  ;;  %v750_v29 = vadd.f32 %v749_v27, %v630_v4  ;;  %v863_v46 = vsel %vm857_vm9, %v845_v32, 0.0 }
 0x22d   : > { %v814_v31 = vmax.f32 %v748_v25, 0.0  ;;  %v840_v34 = vmul.f32 %v828_v18, %v811_v24 }
 0x22e   : > { %v841_v35 = vmul.f32 %v832_v20, %v812_v28  ;;  %v815_v36 = vmax.f32 %v750_v29, 0.0 }
 0x22f   : > { %v843_v37 = vmul.f32 %v828_v18, %v814_v31 }
 0x230   : > { %v844_v40 = vmul.f32 %v832_v20, %v815_v36  ;;  %v753_v41 = vpop.f32.mrb[4].mxu0  ;;  %v856_v42 = vadd.f32 %v841_v35, %v840_v34 }
 0x231   : > { %v754_v44 = vadd.f32 %v753_v41, %v635_v23  ;;  %v755_v45 = vpop.f32.mrb[5].mxu0 }
 0x232   : > { %v756_v47 = vadd.f32 %v755_v45, %v635_v23  ;;  %v757_v48 = vpop.f32.mrb[6].mxu0  ;;  %v859_v49 = vadd.f32 %v858_v39, %v856_v42  ;;  %v862_v50 = vadd.f32 %v844_v40, %v843_v37 }
 0x233   : > { %v817_v52 = vmax.f32 %v754_v44, 0.0  ;;  %v758_v53 = vadd.f32 %v757_v48, %v640_v30  ;;  %v759_v54 = vpop.f32.mrb[7].mxu0 }
 0x234   : > { %v818_v55 = vmax.f32 %v756_v47, 0.0  ;;  %v760_v56 = vadd.f32 %v759_v54, %v640_v30  ;;  %860 = vadd.xlane.f32.xlu1 %v859_v49  ;;  %v864_v57 = vadd.f32 %v863_v46, %v862_v50 }
 0x235   : > { %v846_v58 = vmul.f32 %v828_v18, %v817_v52  ;;  %v820_v59 = vmax.f32 %v758_v53, 0.0 }
 0x236   : > { %v847_v63 = vmul.f32 %v832_v20, %v818_v55  ;;  %v821_v0 = vmax.f32 %v760_v56, 0.0  ;;  %865 = vadd.xlane.f32.xlu0 %v864_v57 }
 0x237   : > { %v849_v1 = vmul.f32 %v828_v18, %v820_v59 }
 0x238   : > { %v850_v3 = vmul.f32 %v832_v20, %v821_v0  ;;  %v867_v4 = vadd.f32 %v847_v63, %v846_v58 }
 0x23a   : > { %v869_v6 = vadd.f32 %v868_v5, %v867_v4  ;;  %v872_v7 = vadd.f32 %v850_v3, %v849_v1 }
 0x23c   : > { %870 = vadd.xlane.f32.xlu0 %v869_v6  ;;  %v874_v9 = vadd.f32 %v873_v8, %v872_v7 }
 0x23e   : > { %875 = vadd.xlane.f32.xlu1 %v874_v9 }
 0x2c1   : > { %v861_v11 = vpop.xlane.xlu1 %860 }
 0x2c2   : > { %v877_v13 = vadd.f32 %v861_v11, %v852_v10 }
 0x2c3   : > { %v866_v61 = vpop.xlane.xlu0 %865 }
 0x2c4   : > { %882 = vst.msk [vmem:[#allocation4] sm:$0xff] %vm881_vm10, %v877_v13  ;;  %v878_v14 = vadd.f32 %v866_v61, %v853_v12 }
 0x2c6   : > { %883 = vst.msk [vmem:[#allocation4 + $0x8] sm:$0xff] %vm881_vm10, %v878_v14 }
 0x2c8   : > { %889 = sbr.rel (%p1042_p8) target bundleno = 848 (0x350), region = 44 }
 0x2c9   : > { %v871_v15 = vpop.xlane.xlu0 %870 }
 0x2ca   : > { %v879_v17 = vadd.f32 %v871_v15, %v854_v60 }
 0x2cb   : > { %v876_v18 = vpop.xlane.xlu1 %875  ;;  %v890_v20 = vld [vmem:[#allocation4] sm:$0xff] (!%p1042_p8) }
 0x2cc   : > { %884 = vst.msk [vmem:[#allocation4 + $0x10] sm:$0xff] %vm881_vm10, %v879_v17  ;;  %v880_v19 = vadd.f32 %v876_v18, %v855_v16  ;;  %v894_v22 = vmul.f32 (!%p1042_p8), 0.0009765625, %v890_v20 }
 0x2cd   : > { %v891_v21 = vld [vmem:[#allocation4 + $0x8] sm:$0xff] (!%p1042_p8) }
 0x2ce   : > { %885 = vst.msk [vmem:[#allocation4 + $0x18] sm:$0xff] %vm881_vm10, %v880_v19  ;;  %898 = vxpose.xlu0.b32.start [1/4] (short) (narrow) (!%p1042_p8), %v894_v22, 8  ;;  %v895_v23 = vmul.f32 (!%p1042_p8), 0.0009765625, %v891_v21 }
 0x2d2   : > { %899 = vxpose.xlu0.b32.cont [2/4] (short) (narrow) %v895_v23, 8 }
 0x2d3   : > { %v892_v24 = vld [vmem:[#allocation4 + $0x10] sm:$0xff] }
 0x2d4   : > { %v896_v25 = vmul.f32 0.0009765625, %v892_v24 }
 0x2d5   : > { %v893_v26 = vld [vmem:[#allocation4 + $0x18] sm:$0xff] }
 0x2d6   : > { %900 = vxpose.xlu0.b32.cont [3/4] (short) (narrow) %v896_v25, 8  ;;  %v897_v27 = vmul.f32 0.0009765625, %v893_v26 }
 0x2da   : > { %901 = vxpose.xlu0.b32.end [4/4] (short) (narrow) %v897_v27, 8 }
 0x34e   : > { %v914_v28 = vpop.trf.xlu0 }
 0x34f   : > { %931 = vst.msk [vmem:[%s219_s26] sm:$0x1] %vm930_vm11, %v914_v28 }
 0x350 PF: > { %s14_s19 = sadd.s32 1, %s1200_s19   ;;  %s1378_s15 = smov %s1192_s17 }
 0x351   : > { %p11_p9 = scmp.ge.s32.totalorder %s14_s19, 10   ;;  %s1379_s16 = smov %s1196_s18 }
 0x352   : > { %s1380_s17 = smov %s1383_s20  ;;  %s1381_s18 = smov %s1387_s21 }
 0x353   :  { %13 = sbr.rel (!%p11_p9) target bundleno = 3 (0x3), region = 74 }

</bundles_post_ra>
